<compile_context>
chip_gen: v7x
topology: tpu7x:2x2x1
jax: 0.10.0
libtpu: 0.0.40
codegen_flags: <defaults>
</compile_context>

<pallas_src>
import jax
import jax.numpy as jnp
from jax.experimental import pallas as pl
from jax.experimental.pallas import tpu as pltpu

LANE = 128
SUBLANE = 8


def _round_up(x, m):
    return ((x + m - 1) // m) * m


def _pad_to(a, shape):
    pads = tuple((0, t - s) for s, t in zip(a.shape, shape))
    if any(p[1] for p in pads):
        return jnp.pad(a, pads)
    return a


# ----------------------------------------------------------------------------
# Fused kernel: backbone (patch-embed projection + global average pool) +
#               head Linear(n_features,256) -> [Dropout=identity] ->
#               Linear(256,128) -> ReLU -> Linear(128,out_features)
# ----------------------------------------------------------------------------
def petnet_fused_kernel(patches_ref, wp_ref, bp_ref, wh_ref, bh_ref,
                        w1_ref, b1_ref, w2_ref, b2_ref, out_ref):
    # patches: (TB, P, Dp) bf16; weights bf16; biases f32; out (TB, OUTp) f32.
    # Pool-before-project: mean over patches commutes with the linear map,
    # so the MXU only sees a (TB, Dp) x (Dp, Fp) matmul.
    pm = jnp.mean(patches_ref[...].astype(jnp.float32), axis=1)          # (TB, Dp)
    feat = jnp.dot(pm.astype(jnp.bfloat16), wp_ref[...],
                   preferred_element_type=jnp.float32) + bp_ref[...]     # (TB, Fp)

    # model.head = Linear(n_features, 256); Dropout(0.2) is identity (eval).
    emb = jnp.dot(feat.astype(jnp.bfloat16), wh_ref[...],
                  preferred_element_type=jnp.float32) + bh_ref[...]      # (TB, 256)

    # fc: Linear(256,128) -> ReLU -> Linear(128, out_features)
    h = jnp.maximum(
        jnp.dot(emb.astype(jnp.bfloat16), w1_ref[...],
                preferred_element_type=jnp.float32) + b1_ref[...], 0.0)  # (TB, 128)
    out_ref[...] = jnp.dot(h.astype(jnp.bfloat16), w2_ref[...],
                           preferred_element_type=jnp.float32) + b2_ref[...]


def petnet_forward(image, params):
    """image: (B, C, H, W) float32 NCHW, matching the PyTorch convention."""
    B, C, H, W = image.shape
    ph = pw = params["patch"]
    P = (H // ph) * (W // pw)
    D = C * ph * pw

    # Patchify NCHW -> (B, P, D) in bf16 (halves the transpose's HBM traffic).
    # TODO(synk): fold the patchify into the kernel via strided loads from the
    # native NCHW layout instead of a separate XLA transpose.
    x = image.astype(jnp.bfloat16)
    x = x.reshape(B, C, H // ph, ph, W // pw, pw)
    x = x.transpose(0, 2, 4, 1, 3, 5).reshape(B, P, D)

    n_features = params["w_patch"].shape[1]
    out_features = params["w2"].shape[1]
    h1 = params["w_head"].shape[1]            # 256
    h2 = params["w1"].shape[1]                # 128

    # Lane-dense (multiple-of-128) padded widths; zero padding keeps results
    # exact and is sliced off at the end.
    Dp = _round_up(D, LANE)
    Fp = _round_up(n_features, LANE)
    H1p = _round_up(h1, LANE)
    H2p = _round_up(h2, LANE)
    OUTp = _round_up(out_features, LANE)

    # Batch tile: >=8 (sublane), <=128 (MXU M), and small enough that the
    # double-buffered bf16 patches tile stays well inside v7x's 64 MiB VMEM.
    budget = 24 * 1024 * 1024
    rows_fit = (budget // (2 * P * Dp * 2)) // SUBLANE * SUBLANE
    TB = int(min(128, max(SUBLANE, rows_fit), _round_up(B, SUBLANE)))
    Bp = _round_up(B, TB)

    x = _pad_to(x, (Bp, P, Dp))

    wp = _pad_to(params["w_patch"], (Dp, Fp)).astype(jnp.bfloat16)
    bp = _pad_to(params["b_patch"], (1, Fp)).astype(jnp.float32)
    wh = _pad_to(params["w_head"], (Fp, H1p)).astype(jnp.bfloat16)
    bh = _pad_to(params["b_head"], (1, H1p)).astype(jnp.float32)
    w1 = _pad_to(params["w1"], (H1p, H2p)).astype(jnp.bfloat16)
    b1 = _pad_to(params["b1"], (1, H2p)).astype(jnp.float32)
    w2 = _pad_to(params["w2"], (H2p, OUTp)).astype(jnp.bfloat16)
    b2 = _pad_to(params["b2"], (1, OUTp)).astype(jnp.float32)

    def _fixed(shape):
        # Weight/bias blocks: same full tile at every grid step -> VMEM-resident.
        return pl.BlockSpec(shape, lambda i: tuple(0 for _ in shape))

    out = pl.pallas_call(
        petnet_fused_kernel,
        out_shape=jax.ShapeDtypeStruct((Bp, OUTp), jnp.float32),
        grid=(Bp // TB,),
        in_specs=[
            pl.BlockSpec((TB, P, Dp), lambda i: (i, 0, 0)),
            _fixed((Dp, Fp)), _fixed((1, Fp)),
            _fixed((Fp, H1p)), _fixed((1, H1p)),
            _fixed((H1p, H2p)), _fixed((1, H2p)),
            _fixed((H2p, OUTp)), _fixed((1, OUTp)),
        ],
        out_specs=pl.BlockSpec((TB, OUTp), lambda i: (i, 0)),
        compiler_params=pltpu.CompilerParams(
            dimension_semantics=("parallel",)),
    )(x, wp, bp, wh, bh, w1, b1, w2, b2)

    return out[:B, :out_features]


def init_params(key, *, inp_channels, patch, n_features, out_features):
    ks = jax.random.split(key, 8)
    D = inp_channels * patch * patch

    def lin(kw, kb, fan_in, fan_out):
        bound = 1.0 / jnp.sqrt(fan_in)
        w = jax.random.uniform(kw, (fan_in, fan_out), jnp.float32, -bound, bound)
        b = jax.random.uniform(kb, (1, fan_out), jnp.float32, -bound, bound)
        return w, b

    w_patch, b_patch = lin(ks[0], ks[1], D, n_features)
    w_head, b_head = lin(ks[2], ks[3], n_features, 256)
    w1, b1 = lin(ks[4], ks[5], 256, 128)
    w2, b2 = lin(ks[6], ks[7], 128, out_features)
    return dict(patch=patch,
                w_patch=w_patch, b_patch=b_patch,
                w_head=w_head, b_head=b_head,
                w1=w1, b1=b1, w2=w2, b2=b2)


def reference_forward(image, params):
    # Pure f32 reference following the original module order
    # (project each patch, then pool, then head MLP).
    B, C, H, W = image.shape
    ph = pw = params["patch"]
    P = (H // ph) * (W // pw)
    D = C * ph * pw
    x = image.reshape(B, C, H // ph, ph, W // pw, pw)
    x = x.transpose(0, 2, 4, 1, 3, 5).reshape(B, P, D)
    emb = jnp.einsum("bpd,df->bpf", x, params["w_patch"]) + params["b_patch"][None]
    feats = jnp.mean(emb, axis=1)
    e = feats @ params["w_head"] + params["b_head"]
    h = jnp.maximum(e @ params["w1"] + params["b1"], 0.0)
    return h @ params["w2"] + params["b2"]


if __name__ == "__main__":
    key = jax.random.PRNGKey(0)
    k_img, k_par = jax.random.split(key)

    B, C, H, W = 2, 4, 16, 16       # small NCHW input
    patch = 4                       # patch-embed kernel == stride
    n_features = 32                 # backbone feature width
    out_features = 8                # PetNet output classes

    image = jax.random.normal(k_img, (B, C, H, W), dtype=jnp.float32)
    params = init_params(k_par, inp_channels=C, patch=patch,
                         n_features=n_features, out_features=out_features)

    out = petnet_forward(image, params)
    out = jax.block_until_ready(out)

    ref = reference_forward(image, params)
    assert out.shape == (B, out_features)
    # bf16 MXU operands (f32 accumulation) -> compare with bf16-level tolerance.
    assert jnp.allclose(out, ref, atol=2e-2, rtol=2e-2)

    print("KERNEL_OK")
</pallas_src>

<mosaic_0001>
module attributes {stable_mosaic.version = 11 : i64} {
  func.func @petnet_fused_kernel(%arg0: i32, %arg1: memref<8x16x128xbf16, #tpu.memory_space<vmem>>, %arg2: memref<128x128xbf16, #tpu.memory_space<vmem>>, %arg3: memref<1x128xf32, #tpu.memory_space<vmem>>, %arg4: memref<128x256xbf16, #tpu.memory_space<vmem>>, %arg5: memref<1x256xf32, #tpu.memory_space<vmem>>, %arg6: memref<256x128xbf16, #tpu.memory_space<vmem>>, %arg7: memref<1x128xf32, #tpu.memory_space<vmem>>, %arg8: memref<128x128xbf16, #tpu.memory_space<vmem>>, %arg9: memref<1x128xf32, #tpu.memory_space<vmem>>, %arg10: memref<8x128xf32, #tpu.memory_space<vmem>>) attributes {dimension_semantics = [#tpu.dimension_semantics<parallel>], iteration_bounds = array<i64: 1>, scalar_prefetch = 0 : i64, scratch_operands = 0 : i64, tpu.core_type = #tpu.core_type<tc>, window_params = [{transform_indices = @transform_0, window_bounds = array<i64: 8, 16, 128>}, {pipeline_mode = #tpu.pipeline_mode<synchronous>, transform_indices = @transform_1, window_bounds = array<i64: 128, 128>}, {pipeline_mode = #tpu.pipeline_mode<synchronous>, transform_indices = @transform_2, window_bounds = array<i64: 1, 128>}, {pipeline_mode = #tpu.pipeline_mode<synchronous>, transform_indices = @transform_3, window_bounds = array<i64: 128, 256>}, {pipeline_mode = #tpu.pipeline_mode<synchronous>, transform_indices = @transform_4, window_bounds = array<i64: 1, 256>}, {pipeline_mode = #tpu.pipeline_mode<synchronous>, transform_indices = @transform_5, window_bounds = array<i64: 256, 128>}, {pipeline_mode = #tpu.pipeline_mode<synchronous>, transform_indices = @transform_6, window_bounds = array<i64: 1, 128>}, {pipeline_mode = #tpu.pipeline_mode<synchronous>, transform_indices = @transform_7, window_bounds = array<i64: 128, 128>}, {pipeline_mode = #tpu.pipeline_mode<synchronous>, transform_indices = @transform_8, window_bounds = array<i64: 1, 128>}, {transform_indices = @transform_9, window_bounds = array<i64: 8, 128>}]} {
    %c0 = arith.constant 0 : index
    %c0_0 = arith.constant 0 : index
    %c0_1 = arith.constant 0 : index
    %0 = vector.load %arg1[%c0, %c0_0, %c0_1] : memref<8x16x128xbf16, #tpu.memory_space<vmem>>, vector<8x16x128xbf16>
    %1 = arith.extf %0 : vector<8x16x128xbf16> to vector<8x16x128xf32>
    %cst = arith.constant dense<0.000000e+00> : vector<8x128xf32>
    %2 = vector.multi_reduction <add>, %1, %cst [1] : vector<8x16x128xf32> to vector<8x128xf32>
    %cst_2 = arith.constant 1.600000e+01 : f32
    %3 = vector.broadcast %cst_2 : f32 to vector<8x128xf32>
    %4 = arith.divf %2, %3 : vector<8x128xf32>
    %5 = arith.truncf %4 : vector<8x128xf32> to vector<8x128xbf16>
    %c0_3 = arith.constant 0 : index
    %c0_4 = arith.constant 0 : index
    %6 = vector.load %arg2[%c0_3, %c0_4] : memref<128x128xbf16, #tpu.memory_space<vmem>>, vector<128x128xbf16>
    %cst_5 = arith.constant dense<0.000000e+00> : vector<8x128xf32>
    %7 = tpu.matmul %5, %6, %cst_5 {dimension_numbers = #tpu.dot_dimension_numbers<[1], [0], [0], [1], [0, 0, 1, 1], [], []>} : vector<8x128xbf16>, vector<128x128xbf16>, vector<8x128xf32> -> vector<8x128xf32>
    %c0_6 = arith.constant 0 : index
    %c0_7 = arith.constant 0 : index
    %8 = vector.load %arg3[%c0_6, %c0_7] : memref<1x128xf32, #tpu.memory_space<vmem>>, vector<1x128xf32>
    %9 = vector.broadcast %8 : vector<1x128xf32> to vector<8x128xf32>
    %10 = arith.addf %7, %9 : vector<8x128xf32>
    %11 = arith.truncf %10 : vector<8x128xf32> to vector<8x128xbf16>
    %c0_8 = arith.constant 0 : index
    %c0_9 = arith.constant 0 : index
    %12 = vector.load %arg4[%c0_8, %c0_9] : memref<128x256xbf16, #tpu.memory_space<vmem>>, vector<128x256xbf16>
    %cst_10 = arith.constant dense<0.000000e+00> : vector<8x256xf32>
    %13 = tpu.matmul %11, %12, %cst_10 {dimension_numbers = #tpu.dot_dimension_numbers<[1], [0], [0], [1], [0, 0, 1, 1], [], []>} : vector<8x128xbf16>, vector<128x256xbf16>, vector<8x256xf32> -> vector<8x256xf32>
    %c0_11 = arith.constant 0 : index
    %c0_12 = arith.constant 0 : index
    %14 = vector.load %arg5[%c0_11, %c0_12] : memref<1x256xf32, #tpu.memory_space<vmem>>, vector<1x256xf32>
    %15 = vector.broadcast %14 : vector<1x256xf32> to vector<8x256xf32>
    %16 = arith.addf %13, %15 : vector<8x256xf32>
    %17 = arith.truncf %16 : vector<8x256xf32> to vector<8x256xbf16>
    %c0_13 = arith.constant 0 : index
    %c0_14 = arith.constant 0 : index
    %18 = vector.load %arg6[%c0_13, %c0_14] : memref<256x128xbf16, #tpu.memory_space<vmem>>, vector<256x128xbf16>
    %cst_15 = arith.constant dense<0.000000e+00> : vector<8x128xf32>
    %19 = tpu.matmul %17, %18, %cst_15 {dimension_numbers = #tpu.dot_dimension_numbers<[1], [0], [0], [1], [0, 0, 1, 1], [], []>} : vector<8x256xbf16>, vector<256x128xbf16>, vector<8x128xf32> -> vector<8x128xf32>
    %c0_16 = arith.constant 0 : index
    %c0_17 = arith.constant 0 : index
    %20 = vector.load %arg7[%c0_16, %c0_17] : memref<1x128xf32, #tpu.memory_space<vmem>>, vector<1x128xf32>
    %21 = vector.broadcast %20 : vector<1x128xf32> to vector<8x128xf32>
    %22 = arith.addf %19, %21 : vector<8x128xf32>
    %cst_18 = arith.constant 0.000000e+00 : f32
    %23 = vector.broadcast %cst_18 : f32 to vector<8x128xf32>
    %24 = arith.maximumf %22, %23 : vector<8x128xf32>
    %25 = arith.truncf %24 : vector<8x128xf32> to vector<8x128xbf16>
    %c0_19 = arith.constant 0 : index
    %c0_20 = arith.constant 0 : index
    %26 = vector.load %arg8[%c0_19, %c0_20] : memref<128x128xbf16, #tpu.memory_space<vmem>>, vector<128x128xbf16>
    %cst_21 = arith.constant dense<0.000000e+00> : vector<8x128xf32>
    %27 = tpu.matmul %25, %26, %cst_21 {dimension_numbers = #tpu.dot_dimension_numbers<[1], [0], [0], [1], [0, 0, 1, 1], [], []>} : vector<8x128xbf16>, vector<128x128xbf16>, vector<8x128xf32> -> vector<8x128xf32>
    %c0_22 = arith.constant 0 : index
    %c0_23 = arith.constant 0 : index
    %28 = vector.load %arg9[%c0_22, %c0_23] : memref<1x128xf32, #tpu.memory_space<vmem>>, vector<1x128xf32>
    %29 = vector.broadcast %28 : vector<1x128xf32> to vector<8x128xf32>
    %30 = arith.addf %27, %29 : vector<8x128xf32>
    %c0_24 = arith.constant 0 : index
    %c0_25 = arith.constant 0 : index
    %31 = vector.load %arg10[%c0_24, %c0_25] : memref<8x128xf32, #tpu.memory_space<vmem>>, vector<8x128xf32>
    tpu.vector_store %arg10[%c0_24, %c0_25], %30 {strides = array<i32>} : memref<8x128xf32, #tpu.memory_space<vmem>>, vector<8x128xf32>,
    return
  }
  func.func @transform_0(%arg0: i32) -> (i32, i32, i32) {
    %c0_i32 = arith.constant 0 : i32
    %c0_i32_0 = arith.constant 0 : i32
    %c0_i32_1 = arith.constant 0 : i32
    return %arg0, %c0_i32, %c0_i32_0 : i32, i32, i32
  }
  func.func @transform_1(%arg0: i32) -> (i32, i32) {
    %c0_i32 = arith.constant 0 : i32
    %c0_i32_0 = arith.constant 0 : i32
    %c0_i32_1 = arith.constant 0 : i32
    return %c0_i32, %c0_i32_0 : i32, i32
  }
  func.func @transform_2(%arg0: i32) -> (i32, i32) {
    %c0_i32 = arith.constant 0 : i32
    %c0_i32_0 = arith.constant 0 : i32
    %c0_i32_1 = arith.constant 0 : i32
    return %c0_i32, %c0_i32_0 : i32, i32
  }
  func.func @transform_3(%arg0: i32) -> (i32, i32) {
    %c0_i32 = arith.constant 0 : i32
    %c0_i32_0 = arith.constant 0 : i32
    %c0_i32_1 = arith.constant 0 : i32
    return %c0_i32, %c0_i32_0 : i32, i32
  }
  func.func @transform_4(%arg0: i32) -> (i32, i32) {
    %c0_i32 = arith.constant 0 : i32
    %c0_i32_0 = arith.constant 0 : i32
    %c0_i32_1 = arith.constant 0 : i32
    return %c0_i32, %c0_i32_0 : i32, i32
  }
  func.func @transform_5(%arg0: i32) -> (i32, i32) {
    %c0_i32 = arith.constant 0 : i32
    %c0_i32_0 = arith.constant 0 : i32
    %c0_i32_1 = arith.constant 0 : i32
    return %c0_i32, %c0_i32_0 : i32, i32
  }
  func.func @transform_6(%arg0: i32) -> (i32, i32) {
    %c0_i32 = arith.constant 0 : i32
    %c0_i32_0 = arith.constant 0 : i32
    %c0_i32_1 = arith.constant 0 : i32
    return %c0_i32, %c0_i32_0 : i32, i32
  }
  func.func @transform_7(%arg0: i32) -> (i32, i32) {
    %c0_i32 = arith.constant 0 : i32
    %c0_i32_0 = arith.constant 0 : i32
    %c0_i32_1 = arith.constant 0 : i32
    return %c0_i32, %c0_i32_0 : i32, i32
  }
  func.func @transform_8(%arg0: i32) -> (i32, i32) {
    %c0_i32 = arith.constant 0 : i32
    %c0_i32_0 = arith.constant 0 : i32
    %c0_i32_1 = arith.constant 0 : i32
    return %c0_i32, %c0_i32_0 : i32, i32
  }
  func.func @transform_9(%arg0: i32) -> (i32, i32) {
    %c0_i32 = arith.constant 0 : i32
    %c0_i32_0 = arith.constant 0 : i32
    return %arg0, %c0_i32 : i32, i32
  }
}

</mosaic_0001>

<bundles_post_ra>
// kernel: tpu_custom_call.1
= control target key start
LH: loop header
LB: loop body
LE: loop exit
PB: predicated region body
PF: predicated region fallthrough
CT: control target
= control target key end

     0   :  { %14 = vsyncpa [#allocation3], 0  ;;  %s1387_s0 = inlined_call_operand.hbm [shape: bf16[8,16,128], index: 0, kind: input, shape index: {}]   ;;  %s1388_s1 = inlined_call_operand.hbm [shape: bf16[128,128], index: 1, kind: input, shape index: {}]   ;;  %s1389_s2 = inlined_call_operand.vmem [shape: f32[1,128], index: 2, kind: input, shape index: {}]   ;;  %s1390_s3 = inlined_call_operand.hbm [shape: bf16[128,256], index: 3, kind: input, shape index: {}]   ;;  %s1391_s4 = inlined_call_operand.vmem [shape: f32[1,256], index: 4, kind: input, shape index: {}]   ;;  %s1392_s5 = inlined_call_operand.hbm [shape: bf16[256,128], index: 5, kind: input, shape index: {}]   ;;  %s1393_s6 = inlined_call_operand.vmem [shape: f32[1,128], index: 6, kind: input, shape index: {}]   ;;  %s1394_s7 = inlined_call_operand.hbm [shape: bf16[128,128], index: 7, kind: input, shape index: {}]   ;;  %s1395_s8 = inlined_call_operand.vmem [shape: f32[1,128], index: 8, kind: input, shape index: {}]   ;;  %s1396_s9 = inlined_call_operand.hbm [shape: f32[8,128], index: 9, kind: output, shape index: {}]  }
   0x1   :  { %15 = vsyncpa [#allocation6], 0 }
   0x2   :  { %16 = vsyncpa [#allocation9], 0 }
   0x3   :  { %17 = vsyncpa [#allocation4], 0  ;;  %s1187_s30 = smov [#allocation5]   ;;  %s1188_s11 = smov [#allocation8]  }
   0x4   :  { %s35_s10 = sshll.u32 %s1187_s30, 4  ;;  %s63_s12 = sshll.u32 %s1188_s11, 4  ;;  %s36_s10 = int_to_ptr.vmem [resolvable:$true] %s35_s10  ;;  %s1250_s12 = int_to_ptr.vmem [resolvable:$true] %s63_s12 }
   0x5   :  { %s1047_s15 = scalar_lea.hbm %s1388_s1, 1024 }
   0x6   :  { %p1048_p0 = scmp.ne.s32.totalorder %s1388_s1, %s1047_s15  ;;  %p1051_p1 = scmp.lt.u32.totalorder %s1047_s15, %s1388_s1 }
   0x8   :  { %p1053_p2 = pnand %p1051_p1, %p1048_p0 }
   0xa   :  { %1056 = shalt.err (!%p1053_p2)
}
   0xb   :  { %s1057_s20 = scalar_lea.vmem %s36_s10, 1024  ;;  %p1062_p4 = scmp.lt.s32.totalorder %s36_s10, %s36_s10 }
   0xc   :  { %p1058_p3 = scmp.ne.s32.totalorder %s36_s10, %s1057_s20  ;;  %p1063_p5 = scmp.lt.s32.totalorder %s1057_s20, %s1057_s20 }
   0xe   :  { %p1064_p6 = por %p1063_p5, %p1062_p4 }
  0x10   :  { %p1065_p7 = pnand %p1064_p6, %p1058_p3 }
  0x12   :  { %1068 = shalt.err (!%p1065_p7)
}
  0x13   :  { %s1189_s21 = smov 64   ;;  %s1190_s22 = smov 4  }
  0x14   :  { %41 = dma.hbm_to_vmem [thread:$0]  %s1388_s1, 1024, %s36_s10, [#allocation6], %s1189_s21, %s1189_s21, %s1190_s22  }
  0x15   :  { %s1069_s27 = scalar_lea.hbm %s1392_s5, 2048 }
  0x16   :  { %p1070_p8 = scmp.ne.s32.totalorder %s1392_s5, %s1069_s27  ;;  %p1073_p9 = scmp.lt.u32.totalorder %s1069_s27, %s1392_s5 }
  0x18   :  { %p1075_p10 = pnand %p1073_p9, %p1070_p8 }
  0x1a   :  { %1078 = shalt.err (!%p1075_p10)
}
  0x1b   :  { %s1079_s13 = scalar_lea.vmem %s1250_s12, 2048  ;;  %p1084_p12 = scmp.lt.s32.totalorder %s1250_s12, %s1250_s12 }
  0x1c   :  { %p1080_p11 = scmp.ne.s32.totalorder %s1250_s12, %s1079_s13  ;;  %p1085_p13 = scmp.lt.s32.totalorder %s1079_s13, %s1079_s13 }
  0x1e   :  { %p1086_p0 = por %p1085_p13, %p1084_p12 }
  0x20   :  { %p1087_p1 = pnand %p1086_p0, %p1080_p11 }
  0x22   :  { %1090 = shalt.err (!%p1087_p1)
}
  0x23   :  { %69 = dma.hbm_to_vmem [thread:$0]  %s1392_s5, 2048, %s1250_s12, [#allocation9], %s1189_s21, %s1189_s21, %s1190_s22  }
  0x24   :  { %s1191_s14 = smov [#allocation2]   ;;  %s1192_s16 = smov [#allocation7]  }
  0x25   :  { %s23_s15 = sshll.u32 %s1191_s14, 4  ;;  %s49_s17 = sshll.u32 %s1192_s16, 4  ;;  %s24_s15 = int_to_ptr.vmem [resolvable:$true] %s23_s15  ;;  %s1287_s17 = int_to_ptr.vmem [resolvable:$true] %s49_s17 }
  0x26   :  { %s1091_s20 = scalar_lea.hbm %s1387_s0, 1024 }
  0x27   :  { %p1092_p2 = scmp.ne.s32.totalorder %s1387_s0, %s1091_s20  ;;  %p1095_p3 = scmp.lt.u32.totalorder %s1091_s20, %s1387_s0 }
  0x29   :  { %p1097_p4 = pnand %p1095_p3, %p1092_p2 }
  0x2b   :  { %1100 = shalt.err (!%p1097_p4)
}
  0x2c   :  { %s1101_s5 = scalar_lea.vmem %s24_s15, 1024  ;;  %p1106_p6 = scmp.lt.s32.totalorder %s24_s15, %s24_s15 }
  0x2d   :  { %p1102_p5 = scmp.ne.s32.totalorder %s24_s15, %s1101_s5  ;;  %p1107_p7 = scmp.lt.s32.totalorder %s1101_s5, %s1101_s5 }
  0x2f   :  { %p1108_p8 = por %p1107_p7, %p1106_p6 }
  0x31   :  { %p1109_p9 = pnand %p1108_p8, %p1102_p5 }
  0x33   :  { %1112 = shalt.err (!%p1109_p9)
}
  0x34   :  { %29 = dma.hbm_to_vmem [thread:$0]  %s1387_s0, 1024, %s24_s15, [#allocation3], %s1189_s21, %s1189_s21, %s1190_s22  }
  0x35   :  { %s1113_s30 = scalar_lea.hbm %s1390_s3, 2048 }
  0x36   :  { %p1114_p10 = scmp.ne.s32.totalorder %s1390_s3, %s1113_s30  ;;  %p1117_p11 = scmp.lt.u32.totalorder %s1113_s30, %s1390_s3 }
  0x38   :  { %p1119_p12 = pnand %p1117_p11, %p1114_p10 }
  0x3a   :  { %1122 = shalt.err (!%p1119_p12)
}
  0x3b   :  { %s1123_s14 = scalar_lea.vmem %s1287_s17, 2048  ;;  %p1128_p0 = scmp.lt.s32.totalorder %s1287_s17, %s1287_s17 }
  0x3c   :  { %p1124_p13 = scmp.ne.s32.totalorder %s1287_s17, %s1123_s14  ;;  %p1129_p1 = scmp.lt.s32.totalorder %s1123_s14, %s1123_s14 }
  0x3e   :  { %p1130_p2 = por %p1129_p1, %p1128_p0 }
  0x40   :  { %p1131_p3 = pnand %p1130_p2, %p1124_p13 }
  0x42   :  { %1134 = shalt.err (!%p1131_p3)
}
  0x43   :  { %s1193_s0 = smov 128   ;;  %s1194_s15 = smov 8  }
  0x44   :  { %55 = dma.hbm_to_vmem [thread:$0]  %s1390_s3, 2048, %s1287_s17, [#allocation6], %s1193_s0, %s1193_s0, %s1194_s15  }
  0x45   :  { %s1195_s19 = smov [#allocation10]   ;;  %s1135_s25 = scalar_lea.hbm %s1394_s7, 1024 }
  0x46   :  { %s77_s20 = sshll.u32 %s1195_s19, 4  ;;  %p1136_p4 = scmp.ne.s32.totalorder %s1394_s7, %s1135_s25  ;;  %s78_s20 = int_to_ptr.vmem [resolvable:$true] %s77_s20 }
  0x47   :  { %p1139_p5 = scmp.lt.u32.totalorder %s1135_s25, %s1394_s7 }
  0x49   :  { %p1141_p6 = pnand %p1139_p5, %p1136_p4 }
  0x4b   :  { %1144 = shalt.err (!%p1141_p6)
}
  0x4c   :  { %s1145_s28 = scalar_lea.vmem %s78_s20, 1024  ;;  %p1150_p8 = scmp.lt.s32.totalorder %s78_s20, %s78_s20 }
  0x4d   :  { %p1146_p7 = scmp.ne.s32.totalorder %s78_s20, %s1145_s28  ;;  %p1151_p9 = scmp.lt.s32.totalorder %s1145_s28, %s1145_s28 }
  0x4f   :  { %p1152_p10 = por %p1151_p9, %p1150_p8 }
  0x51   :  { %p1153_p11 = pnand %p1152_p10, %p1146_p7 }
  0x53   :  { %1156 = shalt.err (!%p1153_p11)
}
  0x54   :  { %83 = dma.hbm_to_vmem [thread:$0]  %s1394_s7, 1024, %s78_s20, [#allocation9], %s1189_s21, %s1189_s21, %s1190_s22  }
  0x55   :  { %1179 = dma.done.wait [#allocation3], 1024  }
  0x56   :  { %1180 = vsyncadd [#allocation3], 4294966272 }
  0x57   :  { %1181 = dma.done.wait [#allocation6], 3072  }
  0x58   :  { %1182 = vsyncadd [#allocation6], 4294964224 }
  0x59   :  { %1183 = dma.done.wait [#allocation9], 3072  }
  0x5a   :  { %1184 = vsyncadd [#allocation9], 4294964224  ;;  %v1196_v0 = vmov 0.0   ;;  %vm1197_vm0 = vmmov 0   ;;  %v991_v1 = vld [vmem:[#allocation5] sm:$0xff]   ;;  %v992_v2 = vld [vmem:[#allocation5 + $0x8] sm:$0xff]  }
  0x5b   :  { %938 = vmatprep.subr.bf16.mxu0 %v1196_v0  ;;  %954 = vmatprep.mubr.msk.bf16.mxu0 %vm1197_vm0, %v1196_v0  ;;  %v993_v3 = vld [vmem:[#allocation5 + $0x10] sm:$0xff]   ;;  %v994_v4 = vld [vmem:[#allocation5 + $0x18] sm:$0xff]   ;;  %v860_v5 = vld [vmem:[#allocation2] sm:$0xff]   ;;  %vm246_vm1 = vcmask 1041409   ;;  %vm248_vm2 = vcmask 1042434   ;;  %vm250_vm3 = vcmask 1043459  }
  0x5c   :  { %939 = vmatpush3.bf16.msra.mxu0 %v991_v1  ;;  %v891_v6 = vld [vmem:[#allocation2 + $0x8] sm:$0xff]   ;;  %v892_v7 = vld [vmem:[#allocation2 + $0x10] sm:$0xff]   ;;  %v861_v8 = vunpack.c.l.bf16 %v860_v5  ;;  %v862_v9 = vunpack.c.h.bf16 %v860_v5  ;;  %v893_v12 = vld [vmem:[#allocation2 + $0x18] sm:$0xff]   ;;  %vm252_vm4 = vcmask 1044484   ;;  %vm254_vm5 = vcmask 1045509   ;;  %s1199_s13 = smov [#allocation11]  }
  0x5d   :  { %940 = vmatprep.subr.bf16.mxu0 %v1196_v0  ;;  %v865_v10 = vunpack.c.l.bf16 %v891_v6  ;;  %v866_v11 = vunpack.c.h.bf16 %v891_v6  ;;  %v894_v13 = vld [vmem:[#allocation2 + $0x20] sm:$0xff]   ;;  %v895_v14 = vld [vmem:[#allocation2 + $0x28] sm:$0xff]   ;;  %v869_v15 = vunpack.c.l.bf16 %v892_v7  ;;  %v870_v16 = vunpack.c.h.bf16 %v892_v7  ;;  %v896_v19 = vld [vmem:[#allocation2 + $0x30] sm:$0xff]   ;;  %s797_s1 = sshll.u32 %s1199_s13, 4  ;;  %s798_s1 = int_to_ptr.vmem [resolvable:$true] %s797_s1 }
  0x5e   :  { %v873_v17 = vunpack.c.l.bf16 %v893_v12  ;;  %v874_v18 = vunpack.c.h.bf16 %v893_v12  ;;  %v897_v20 = vld [vmem:[#allocation2 + $0x38] sm:$0xff]   ;;  %v877_v21 = vunpack.c.l.bf16 %v894_v13  ;;  %v878_v22 = vunpack.c.h.bf16 %v894_v13  ;;  %v999_v25 = vld [vmem:[#allocation7 + $0x4] ss:$8 sps:$4 sm:$0xff]   ;;  %v1001_v26 = vld [vmem:[#allocation7] ss:$8 sps:$4 sm:$0xff]   ;;  %p1162_p13 = scmp.lt.s32.totalorder %s798_s1, %s798_s1 }
  0x5f   :  { %v881_v23 = vunpack.c.l.bf16 %v895_v14  ;;  %v882_v24 = vunpack.c.h.bf16 %v895_v14  ;;  %v885_v27 = vunpack.c.l.bf16 %v896_v19  ;;  %v886_v28 = vunpack.c.h.bf16 %v896_v19  ;;  %v1002_v31 = vld [vmem:[#allocation7 + $0x14] ss:$8 sps:$4 sm:$0xff]   ;;  %459 = vmatprep.subr.bf16.mxu1 %v999_v25  ;;  %v995_v36 = vld [vmem:[#allocation5 + $0x20] sm:$0xff]   ;;  %v1004_v41 = vld [vmem:[#allocation7 + $0x10] ss:$8 sps:$4 sm:$0xff]  }
  0x60   :  { %941 = vmatpush3.bf16.msra.mxu0 %v992_v2  ;;  %v889_v29 = vunpack.c.l.bf16 %v897_v20  ;;  %v890_v30 = vunpack.c.h.bf16 %v897_v20  ;;  %v134_v32 = vadd.f32 %v862_v9, %v861_v8  ;;  %v141_v33 = vadd.f32 %v866_v11, %v865_v10  ;;  %460 = vmatpush1.bf16.msra.mxu1 %v1001_v26  ;;  %v1005_v50 = vld [vmem:[#allocation7 + $0x24] ss:$8 sps:$4 sm:$0xff]   ;;  %v1007_v1 = vld [vmem:[#allocation7 + $0x20] ss:$8 sps:$4 sm:$0xff]   ;;  %v1008_v6 = vld [vmem:[#allocation7 + $0x34] ss:$8 sps:$4 sm:$0xff]  }
  0x61   :  { %942 = vmatprep.subr.bf16.mxu0 %v1196_v0  ;;  %v148_v34 = vadd.f32 %v870_v16, %v869_v15  ;;  %v155_v35 = vadd.f32 %v874_v18, %v873_v17  ;;  %v162_v37 = vadd.f32 %v878_v22, %v877_v21  ;;  %v169_v38 = vadd.f32 %v882_v24, %v881_v23  ;;  %v996_v55 = vld [vmem:[#allocation5 + $0x28] sm:$0xff]   ;;  %v997_v7 = vld [vmem:[#allocation5 + $0x30] sm:$0xff]   ;;  %v998_v22 = vld [vmem:[#allocation5 + $0x38] sm:$0xff]  }
  0x62   :  { %v176_v39 = vadd.f32 %v886_v28, %v885_v27  ;;  %v183_v40 = vadd.f32 %v890_v30, %v889_v29  ;;  %v135_v42 = vrot.slane %v134_v32, 4  ;;  %v142_v43 = vrot.slane %v141_v33, 4  ;;  %461 = vmatprep.subr.bf16.mxu1 %v1002_v31  ;;  %v1010_v16 = vld [vmem:[#allocation7 + $0x30] ss:$8 sps:$4 sm:$0xff]   ;;  %v1011_v17 = vld [vmem:[#allocation7 + $0x44] ss:$8 sps:$4 sm:$0xff]  }
  0x63   :  { %v149_v44 = vrot.slane %v148_v34, 4  ;;  %v156_v45 = vrot.slane %v155_v35, 4  ;;  %v163_v46 = vrot.slane %v162_v37, 4  ;;  %v170_v47 = vrot.slane %v169_v38, 4  ;;  %v1013_v31 = vld [vmem:[#allocation7 + $0x40] ss:$8 sps:$4 sm:$0xff]  }
  0x64   :  { %943 = vmatpush3.bf16.msra.mxu0 %v993_v3  ;;  %v177_v48 = vrot.slane %v176_v39, 4  ;;  %v184_v49 = vrot.slane %v183_v40, 4  ;;  %v136_v51 = vadd.f32 %v135_v42, %v134_v32  ;;  %v143_v52 = vadd.f32 %v142_v43, %v141_v33  ;;  %462 = vmatpush1.bf16.msra.mxu1 %v1004_v41 }
  0x65   :  { %944 = vmatprep.subr.bf16.mxu0 %v1196_v0  ;;  %v150_v53 = vadd.f32 %v149_v44, %v148_v34  ;;  %v157_v54 = vadd.f32 %v156_v45, %v155_v35  ;;  %v164_v56 = vadd.f32 %v163_v46, %v162_v37  ;;  %v171_v57 = vadd.f32 %v170_v47, %v169_v38 }
  0x66   :  { %v178_v58 = vadd.f32 %v177_v48, %v176_v39  ;;  %v185_v59 = vadd.f32 %v184_v49, %v183_v40  ;;  %v137_v60 = vrot.slane %v136_v51, 2  ;;  %v144_v61 = vrot.slane %v143_v52, 2  ;;  %463 = vmatprep.subr.bf16.mxu1 %v1005_v50  ;;  %v1016_v49 = vld [vmem:[#allocation7 + $0x50] ss:$8 sps:$4 sm:$0xff]  }
  0x67   :  { %v151_v62 = vrot.slane %v150_v53, 2  ;;  %v158_v63 = vrot.slane %v157_v54, 2  ;;  %v165_v2 = vrot.slane %v164_v56, 2  ;;  %v172_v3 = vrot.slane %v171_v57, 2 }
  0x68   :  { %945 = vmatpush3.bf16.msra.mxu0 %v994_v4  ;;  %v179_v4 = vrot.slane %v178_v58, 2  ;;  %v186_v5 = vrot.slane %v185_v59, 2  ;;  %v138_v8 = vadd.f32 %v137_v60, %v136_v51  ;;  %v145_v9 = vadd.f32 %v144_v61, %v143_v52  ;;  %464 = vmatpush1.bf16.msra.mxu1 %v1007_v1 }
  0x69   :  { %946 = vmatprep.subr.bf16.mxu0 %v1196_v0  ;;  %v152_v10 = vadd.f32 %v151_v62, %v150_v53  ;;  %v159_v11 = vadd.f32 %v158_v63, %v157_v54  ;;  %v166_v12 = vadd.f32 %v165_v2, %v164_v56  ;;  %v173_v13 = vadd.f32 %v172_v3, %v171_v57  ;;  %v1017_v54 = vld [vmem:[#allocation7 + $0x64] ss:$8 sps:$4 sm:$0xff]   ;;  %v1019_v62 = vld [vmem:[#allocation7 + $0x60] ss:$8 sps:$4 sm:$0xff]  }
  0x6a   :  { %v180_v14 = vadd.f32 %v179_v4, %v178_v58  ;;  %v187_v15 = vadd.f32 %v186_v5, %v185_v59  ;;  %v139_v18 = vrot.slane %v138_v8, 1  ;;  %v146_v19 = vrot.slane %v145_v9, 1  ;;  %465 = vmatprep.subr.bf16.mxu1 %v1008_v6 }
  0x6b   :  { %v153_v20 = vrot.slane %v152_v10, 1  ;;  %v160_v21 = vrot.slane %v159_v11, 1  ;;  %v167_v23 = vrot.slane %v166_v12, 1  ;;  %v174_v24 = vrot.slane %v173_v13, 1 }
  0x6c   :  { %947 = vmatpush3.bf16.msra.mxu0 %v995_v36  ;;  %v181_v25 = vrot.slane %v180_v14, 1  ;;  %v188_v26 = vrot.slane %v187_v15, 1  ;;  %v140_v27 = vadd.f32 %v139_v18, %v138_v8  ;;  %v147_v28 = vadd.f32 %v146_v19, %v145_v9  ;;  %v1014_v36 = vld [vmem:[#allocation7 + $0x54] ss:$8 sps:$4 sm:$0xff]   ;;  %466 = vmatpush1.bf16.msra.mxu1 %v1010_v16 }
  0x6d   :  { %948 = vmatprep.subr.bf16.mxu0 %v1196_v0  ;;  %v154_v29 = vadd.f32 %v153_v20, %v152_v10  ;;  %v161_v30 = vadd.f32 %v160_v21, %v159_v11  ;;  %v168_v32 = vadd.f32 %v167_v23, %v166_v12  ;;  %v175_v33 = vadd.f32 %v174_v24, %v173_v13  ;;  %v1020_v9 = vld [vmem:[#allocation7 + $0x74] ss:$8 sps:$4 sm:$0xff]   ;;  %v1022_v10 = vld [vmem:[#allocation7 + $0x70] ss:$8 sps:$4 sm:$0xff]   ;;  %v1023_v12 = vld [vmem:[#allocation8 + $0x40] sm:$0xff]  }
  0x6e   :  { %v182_v34 = vadd.f32 %v181_v25, %v180_v14  ;;  %v189_v35 = vadd.f32 %v188_v26, %v187_v15  ;;  %v191_v37 = vmul.f32 0.0625, %v140_v27  ;;  %v192_v38 = vmul.f32 0.0625, %v147_v28  ;;  %467 = vmatprep.subr.bf16.mxu1 %v1011_v17  ;;  %v1024_v13 = vld [vmem:[#allocation8] sm:$0xff]   ;;  %v1025_v14 = vld [vmem:[#allocation8 + $0x48] sm:$0xff]   ;;  %v1027_v16 = vld [vmem:[#allocation8 + $0x50] sm:$0xff]  }
  0x6f   :  { %v193_v39 = vmul.f32 0.0625, %v154_v29  ;;  %v194_v40 = vmul.f32 0.0625, %v161_v30  ;;  %vm256_vm6 = vcmask 1046534   ;;  %v195_v41 = vmul.f32 0.0625, %v168_v32  ;;  %v1026_v15 = vld [vmem:[#allocation8 + $0x8] sm:$0xff]   ;;  %v1028_v17 = vld [vmem:[#allocation8 + $0x10] sm:$0xff]  }
  0x70   :  { %949 = vmatpush3.bf16.msra.mxu0 %v996_v55  ;;  %v196_v42 = vmul.f32 0.0625, %v175_v33  ;;  %v197_v43 = vmul.f32 0.0625, %v182_v34  ;;  %v198_v44 = vmul.f32 0.0625, %v189_v35  ;;  %vm258_vm7 = vcmask 1047559   ;;  %468 = vmatpush1.bf16.msra.mxu1 %v1013_v31  ;;  %v1029_v18 = vld [vmem:[#allocation8 + $0x58] sm:$0xff]   ;;  %v1031_v20 = vld [vmem:[#allocation8 + $0x60] sm:$0xff]  }
  0x71   :  { %950 = vmatprep.subr.bf16.mxu0 %v1196_v0  ;;  %v199_v45 = vpack.c.bf16 %v191_v37, %v191_v37  ;;  %v200_v46 = vpack.c.bf16 %v192_v38, %v192_v38  ;;  %v201_v47 = vpack.c.bf16 %v193_v39, %v193_v39  ;;  %v202_v48 = vpack.c.bf16 %v194_v40, %v194_v40  ;;  %v1030_v19 = vld [vmem:[#allocation8 + $0x18] sm:$0xff]   ;;  %v1032_v21 = vld [vmem:[#allocation8 + $0x20] sm:$0xff]   ;;  %v1034_v23 = vld [vmem:[#allocation8 + $0x28] sm:$0xff]  }
  0x72   :  { %v203_v50 = vpack.c.bf16 %v195_v41, %v195_v41  ;;  %v204_v51 = vpack.c.bf16 %v196_v42, %v196_v42  ;;  %v205_v52 = vpack.c.bf16 %v197_v43, %v197_v43  ;;  %v206_v53 = vpack.c.bf16 %v198_v44, %v198_v44  ;;  %469 = vmatprep.subr.bf16.mxu1 %v1014_v36  ;;  %v1035_v24 = vld [vmem:[#allocation8 + $0x70] sm:$0xff]   ;;  %v808_v25 = vld [vmem:[%s1389_s2] ss:$0 sm:$0xff]  ;;  %v1037_v33 = vld [vmem:[#allocation8 + $0x78] sm:$0xff]  }
  0x73   :  { %v238_v55 = vunpack.c.l.b16 %v199_v45  ;;  %v239_v56 = vunpack.c.l.b16 %v200_v46  ;;  %v240_v57 = vunpack.c.l.b16 %v201_v47  ;;  %v241_v58 = vunpack.c.l.b16 %v202_v48  ;;  %v1036_v32 = vld [vmem:[#allocation8 + $0x30] sm:$0xff]   ;;  %v1038_v34 = vld [vmem:[#allocation8 + $0x38] sm:$0xff]   ;;  %v1039_v35 = vld [vmem:[#allocation10] sm:$0xff]  }
  0x74   :  { %951 = vmatpush3.bf16.msra.mxu0 %v997_v7  ;;  %v242_v59 = vunpack.c.l.b16 %v203_v50  ;;  %v243_v60 = vunpack.c.l.b16 %v204_v51  ;;  %v244_v63 = vunpack.c.l.b16 %v205_v52  ;;  %v245_v2 = vunpack.c.l.b16 %v206_v53  ;;  %470 = vmatpush1.bf16.msra.mxu1 %v1016_v49  ;;  %v1040_v36 = vld [vmem:[#allocation10 + $0x8] sm:$0xff]   ;;  %v1041_v37 = vld [vmem:[#allocation10 + $0x10] sm:$0xff]   ;;  %v1042_v38 = vld [vmem:[#allocation10 + $0x18] sm:$0xff]  }
  0x75   :  { %952 = vmatprep.subr.bf16.mxu0 %v1196_v0  ;;  %v247_v61 = vsel %vm246_vm1, %v239_v56, %v238_v55  ;;  %471 = vmatprep.subr.bf16.mxu1 %v1017_v54  ;;  %v1198_v11 = vmov 0   ;;  %v1043_v39 = vld [vmem:[#allocation10 + $0x20] sm:$0xff]   ;;  %v1044_v40 = vld [vmem:[#allocation10 + $0x28] sm:$0xff]   ;;  %v369_v41 = vlaneseq  ;;  %v1045_v56 = vld [vmem:[#allocation10 + $0x30] sm:$0xff]  }
  0x76   :  { %v249_v1 = vsel %vm248_vm2, %v240_v57, %v247_v61  ;;  %491 = vmatprep.mubr.bf16.mxu1 %v1198_v11  ;;  %v367_v44 = vld [vmem:[%s1391_s4] sm:$0x3]  ;;  %v1046_v57 = vld [vmem:[#allocation10 + $0x38] sm:$0xff]  }
  0x77   :  { %v251_v3 = vsel %vm250_vm3, %v241_v58, %v249_v1  ;;  %v370_v42 = vshrl.u32 %v369_v41, 7 }
  0x78   :  { %953 = vmatpush3.bf16.msra.mxu0 %v998_v22  ;;  %v253_v4 = vsel %vm252_vm4, %v242_v59, %v251_v3  ;;  %472 = vmatpush1.bf16.msra.mxu1 %v1019_v62  ;;  %v1033_v22 = vld [vmem:[#allocation8 + $0x68] sm:$0xff]   ;;  %v833_v59 = vld [vmem:[%s1393_s6] ss:$0 sm:$0xff]  ;;  %s1157_s6 = scalar_lea.vmem %s798_s1, 128 }
  0x79   :  { %v255_v5 = vsel %vm254_vm5, %v243_v60, %v253_v4  ;;  %473 = vmatprep.subr.bf16.mxu1 %v1020_v9  ;;  %907 = vmatprep.subr.bf16.mxu0 %v1023_v12  ;;  %v371_v43 = vsub.s32 0, %v370_v42  ;;  %v375_v45 = vsub.s32 1, %v370_v42  ;;  %v850_v4 = vld [vmem:[%s1395_s8] ss:$0 sm:$0xff]  ;;  %p1158_p12 = scmp.ne.s32.totalorder %s798_s1, %s1157_s6  ;;  %p1163_p0 = scmp.lt.s32.totalorder %s1157_s6, %s1157_s6 }
  0x7a   :  { %v257_v6 = vsel %vm256_vm6, %v244_v63, %v255_v5 }
  0x7b   :  { %v259_v7 = vsel %vm258_vm7, %v245_v2, %v257_v6  ;;  %v372_v46 = vrot.slane %v367_v44, %v371_v43  ;;  %v376_v47 = vrot.slane %v367_v44, %v375_v45  ;;  %p1164_p1 = por %p1163_p0, %p1162_p13 }
  0x7c   :  { %v260_v8 = vpack.c.b16 %v259_v7, %v259_v7  ;;  %474 = vmatpush1.bf16.msra.mxu1 %v1022_v10 }
  0x7d   :  { %958 = vmatprep.subr.bf16.mxu1 %v1196_v0  ;;  %p1165_p2 = pnand %p1164_p1, %p1158_p12 }
  0x7e   :  { %955 = vmatmul.mubr.bf16.vlgmr.msra.gmra.mrb[0].mxu0 %v260_v8 }
  0x7f   :  { %908 = vmatpush3.bf16.msra.mxu0 %v1024_v13 }
  0x80   :  { %909 = vmatprep.subr.bf16.mxu0 %v1025_v14 }
  0x83   :  { %910 = vmatpush3.bf16.msra.mxu0 %v1026_v15 }
  0x84   :  { %911 = vmatprep.subr.bf16.mxu0 %v1027_v16 }
  0x87   :  { %912 = vmatpush3.bf16.msra.mxu0 %v1028_v17 }
  0x88   :  { %913 = vmatprep.subr.bf16.mxu0 %v1029_v18 }
  0x8b   :  { %914 = vmatpush3.bf16.msra.mxu0 %v1030_v19 }
  0x8c   :  { %915 = vmatprep.subr.bf16.mxu0 %v1031_v20 }
  0x8f   :  { %916 = vmatpush3.bf16.msra.mxu0 %v1032_v21 }
  0x90   :  { %917 = vmatprep.subr.bf16.mxu0 %v1033_v22 }
  0x93   :  { %918 = vmatpush3.bf16.msra.mxu0 %v1034_v23 }
  0x94   :  { %919 = vmatprep.subr.bf16.mxu0 %v1035_v24 }
  0x97   :  { %920 = vmatpush3.bf16.msra.mxu0 %v1036_v32 }
  0x98   :  { %921 = vmatprep.subr.bf16.mxu0 %v1037_v33 }
  0x9b   :  { %922 = vmatpush3.bf16.msra.mxu0 %v1038_v34 }
 0x151   :  { %v344_v26 = vpop.f32.mrb[0].mxu0 }
 0x152   :  { %v345_v27 = vadd.f32 %v808_v25, %v344_v26  ;;  %v956_v28 = vpop.f32.mrb[1].mxu0 }
 0x153   :  { %v347_v29 = vpop.f32.mrb[2].mxu0 }
 0x154   :  { %v350_v30 = vpack.c.bf16 %v345_v27, %v345_v27  ;;  %v957_v31 = vpop.f32.mrb[3].mxu0 }
 0x156   :  { %492 = vmatmul.mubr.bf16.vlgmr.msra.gmra.mrb[0].mxu1 %v350_v30 }
 0x157   :  { %974 = vmatprep.mubr.msk.bf16.mxu1 %vm1197_vm0, %v1196_v0  ;;  %959 = vmatpush3.bf16.msra.mxu1 %v1039_v35 }
 0x158   :  { %960 = vmatprep.subr.bf16.mxu1 %v1196_v0 }
 0x15b   :  { %961 = vmatpush3.bf16.msra.mxu1 %v1040_v36 }
 0x15c   :  { %962 = vmatprep.subr.bf16.mxu1 %v1196_v0 }
 0x15f   :  { %963 = vmatpush3.bf16.msra.mxu1 %v1041_v37 }
 0x160   :  { %964 = vmatprep.subr.bf16.mxu1 %v1196_v0 }
 0x163   :  { %965 = vmatpush3.bf16.msra.mxu1 %v1042_v38 }
 0x164   :  { %966 = vmatprep.subr.bf16.mxu1 %v1196_v0 }
 0x167   :  { %967 = vmatpush3.bf16.msra.mxu1 %v1043_v39 }
 0x168   :  { %968 = vmatprep.subr.bf16.mxu1 %v1196_v0 }
 0x16b   :  { %969 = vmatpush3.bf16.msra.mxu1 %v1044_v40 }
 0x16c   :  { %970 = vmatprep.subr.bf16.mxu1 %v1196_v0 }
 0x16f   :  { %971 = vmatpush3.bf16.msra.mxu1 %v1045_v56 }
 0x170   :  { %972 = vmatprep.subr.bf16.mxu1 %v1196_v0 }
 0x173   :  { %973 = vmatpush3.bf16.msra.mxu1 %v1046_v57 }
 0x229   :  { %v493_v48 = vpop.f32.mrb[0].mxu1 }
 0x22a   :  { %v494_v49 = vadd.f32 %v493_v48, %v372_v46  ;;  %v495_v50 = vpop.f32.mrb[1].mxu1 }
 0x22b   :  { %v496_v51 = vadd.f32 %v495_v50, %v376_v47  ;;  %v497_v52 = vpop.f32.mrb[2].mxu1 }
 0x22c   :  { %v498_v53 = vpop.f32.mrb[3].mxu1  ;;  %v500_v55 = vpack.c.bf16 %v494_v49, %v494_v49 }
 0x22d   :  { %v501_v54 = vpack.c.bf16 %v496_v51, %v496_v51 }
 0x22f   :  { %669 = vmatprep.mubr.bf16.mxu0 %v501_v54 }
 0x230   :  { %670 = vmatmul.mubr.bf16.vlgmr.msra.gmra.mrb[4].mxu0 %v500_v55 }
 0x303   :  { %v923_v58 = vpop.f32.mrb[4].mxu0 }
 0x304   :  { %v924_v60 = vpop.f32.mrb[5].mxu0 }
 0x305   :  { %v925_v61 = vadd.f32 %v924_v60, %v923_v58  ;;  %v926_v62 = vpop.f32.mrb[6].mxu0 }
 0x306   :  { %v927_v63 = vpop.f32.mrb[7].mxu0 }
 0x307   :  { %v672_v1 = vadd.f32 %v925_v61, %v833_v59 }
 0x309   :  { %v677_v2 = vmax.f32 %v672_v1, 0.0 }
 0x30b   :  { %v678_v3 = vpack.c.bf16 %v677_v2, %v677_v2 }
 0x30d   :  { %975 = vmatmul.mubr.bf16.vlgmr.msra.gmra.mrb[4].mxu1 %v678_v3 }
 0x3e0   :  { %v784_v0 = vpop.f32.mrb[4].mxu1 }
 0x3e1   :  { %v785_v5 = vadd.f32 %v850_v4, %v784_v0  ;;  %v976_v6 = vpop.f32.mrb[5].mxu1 }
 0x3e2   :  { %v787_v7 = vpop.f32.mrb[6].mxu1 }
 0x3e3   :  { %790 = vst [vmem:[#allocation11] sm:$0xff] %v785_v5  ;;  %v977_v8 = vpop.f32.mrb[7].mxu1 }
 0x3e4   :  { %1168 = shalt.err (!%p1165_p2)
}
 0x3e5   :  { %s1169_s8 = scalar_lea.hbm %s1396_s9, 128 }
 0x3e6   :  { %p1170_p3 = scmp.ne.s32.totalorder %s1396_s9, %s1169_s8  ;;  %p1173_p4 = scmp.lt.u32.totalorder %s1169_s8, %s1396_s9 }
 0x3e8   :  { %p1175_p5 = pnand %p1173_p4, %p1170_p3 }
 0x3ea   :  { %1178 = shalt.err (!%p1175_p5)
}
 0x3eb   :  { %800 = dma.vmem_to_hbm [thread:$0]  %s798_s1, 128, %s1396_s9, [#allocation4]  }
 0x3ec   :  { %1185 = dma.done.wait [#allocation4], 128  }
 0x3ed   :  { %1186 = vsyncadd [#allocation4], 4294967168 }
 0x3ee   :  { %804 = vsyncpa [#allocation3], 1 }
 0x3ef   :  { %805 = vsyncpa [#allocation6], 1 }
 0x3f0   :  { %806 = vsyncpa [#allocation9], 1 }
 0x3f1   :  { %807 = vsyncpa [#allocation4], 1 }

</bundles_post_ra>
